<compile_context>
chip_gen: v6e
topology: v6e:2x2x1
jax: 0.10.0
libtpu: 0.0.40
codegen_flags: <defaults>
</compile_context>

<pallas_src>
import jax
import jax.numpy as jnp
from jax.experimental import pallas as pl
from jax.experimental.pallas import tpu as pltpu

_MiB = 1024 * 1024
_LANE_CANDIDATES = (4096, 2048, 1024, 512, 256, 128)


def _hard_swish_kernel(x_ref, o_ref):
    x = x_ref[...]
    # hard_swish_jit_fwd: input * (input + 3).clamp(0, 6) / 6
    gate = jnp.clip(x + 3.0, 0.0, 6.0) * (1.0 / 6.0)
    o_ref[...] = (x * gate).astype(o_ref.dtype)


def _num_tensorcores_per_chip() -> int:
    """2 on v7x-style chips (2 TC/chip), 1 on v5e/v6e. Safe default: 1."""
    try:
        kind = jax.devices()[0].device_kind.lower()
    except Exception:
        return 1
    return 2 if ("v7" in kind or "7x" in kind) else 1


def _block_knobs(num_tc: int):
    if num_tc >= 2:
        # v7x: 64 MiB VMEM/TC, 3.2 TB/s HBM -> 4 MiB blocks, keep 2x(in+out)
        # double buffers well under the 32 MiB scoped limit.
        return {"target_bytes": 4 * _MiB, "single_cap": 4 * _MiB,
                "vmem_limit": 32 * _MiB}
    # v5e/v6e: single TC, 128 MiB physical VMEM -> bigger blocks, and never
    # shrink blocks to manufacture "parallel" steps (no second core to feed).
    return {"target_bytes": 8 * _MiB, "single_cap": 8 * _MiB,
            "vmem_limit": 64 * _MiB}


def _pick_row_block(rows: int, row_bytes: int, num_tc: int, knobs) -> int:
    """Row-block size: multiple of 32 (native tiling for f32/bf16/int8) or full dim."""
    total = rows * row_bytes
    if rows <= 32 or total <= knobs["single_cap"]:
        return rows  # one block (full-dim block shape is always legal)
    if num_tc >= 2 and total <= 2 * knobs["target_bytes"]:
        # Medium tensor on a 2-TC chip: exactly two near-equal blocks, one per core.
        half = (rows + 1) // 2
        return min(rows, ((half + 31) // 32) * 32)
    target_rows = max(32, (knobs["target_bytes"] // row_bytes) // 32 * 32)
    return max(32, min(target_rows, (rows // 32) * 32))


def hard_swish_me(x: jax.Array) -> jax.Array:
    """Elementwise hard-swish matching HardSwishMe.forward. Accepts any shape."""
    orig_shape = x.shape
    dtype = x.dtype
    n = x.size
    if n == 0:
        return x

    num_tc = _num_tensorcores_per_chip()
    knobs = _block_knobs(num_tc)
    itemsize = jnp.dtype(dtype).itemsize
    cparams = pltpu.CompilerParams(
        dimension_semantics=("parallel",),
        vmem_limit_bytes=knobs["vmem_limit"],
    )

    # ---- common case: 128-aligned element count -> lane-dense 2-D slab ----
    lanes = next((c for c in _LANE_CANDIDATES if n % c == 0), None)
    if lanes is not None:
        rows = n // lanes
        x2d = x.reshape(rows, lanes)
        tr = _pick_row_block(rows, lanes * itemsize, num_tc, knobs)
        out2d = pl.pallas_call(
            _hard_swish_kernel,
            out_shape=jax.ShapeDtypeStruct((rows, lanes), dtype),
            grid=(pl.cdiv(rows, tr),),
            in_specs=[pl.BlockSpec((tr, lanes), lambda i: (i, 0))],
            out_specs=pl.BlockSpec((tr, lanes), lambda i: (i, 0)),
            compiler_params=cparams,
        )(x2d)
        return out2d.reshape(orig_shape)

    # ---- unaligned element count (rare): 1-D cdiv grid, ragged last block is
    # write-masked by Pallas -> no pad copy and no output-trim copy ----
    flat = x.reshape(-1)
    blk = max(8 * 128, (knobs["target_bytes"] // itemsize) // (32 * 128) * (32 * 128))
    if n <= blk:
        blk = n  # whole tensor in one (full-dim) block
    out_flat = pl.pallas_call(
        _hard_swish_kernel,
        out_shape=jax.ShapeDtypeStruct((n,), dtype),
        grid=(pl.cdiv(n, blk),),
        in_specs=[pl.BlockSpec((blk,), lambda i: (i,))],
        out_specs=pl.BlockSpec((blk,), lambda i: (i,)),
        compiler_params=cparams,
    )(flat)
    return out_flat.reshape(orig_shape)


# TODO(synk): backward pass (hard_swish_jit_bwd / custom autograd) not implemented;
# this covers the module's forward only.


if __name__ == "__main__":
    key = jax.random.PRNGKey(0)

    # NCHW input, small shape (batch=2, channels=4, spatial=16x16) -> 2-D aligned path.
    x = jax.random.normal(key, (2, 4, 16, 16), dtype=jnp.float32) * 4.0
    out = jax.block_until_ready(hard_swish_me(x))
    ref = x * jnp.clip(x + 3.0, 0.0, 6.0) / 6.0
    assert out.shape == x.shape and out.dtype == x.dtype
    assert jnp.allclose(out, ref, atol=1e-5, rtol=1e-5), "mismatch vs reference (f32)"

    # Element count not divisible by 128 -> exercises the no-pad 1-D path.
    x2 = jax.random.normal(jax.random.PRNGKey(1), (3, 7, 40, 40), dtype=jnp.float32) * 4.0
    out2 = jax.block_until_ready(hard_swish_me(x2))
    ref2 = x2 * jnp.clip(x2 + 3.0, 0.0, 6.0) / 6.0
    assert out2.shape == x2.shape and out2.dtype == x2.dtype
    assert jnp.allclose(out2, ref2, atol=1e-5, rtol=1e-5), "mismatch vs reference (unaligned)"

    # bf16, 128-aligned, multi-row slab -> checks dtype preservation & 2-D tiling.
    x3 = jax.random.normal(jax.random.PRNGKey(2), (8, 32, 32, 32), dtype=jnp.bfloat16) * 4.0
    out3 = jax.block_until_ready(hard_swish_me(x3))
    xf = x3.astype(jnp.float32)
    ref3 = xf * jnp.clip(xf + 3.0, 0.0, 6.0) / 6.0
    assert out3.shape == x3.shape and out3.dtype == x3.dtype
    assert jnp.allclose(out3.astype(jnp.float32), ref3, atol=0.5, rtol=0.05), \
        "mismatch vs reference (bf16)"

    print("KERNEL_OK")
</pallas_src>

<mosaic_0001>
module attributes {stable_mosaic.version = 11 : i64} {
  func.func @_hard_swish_kernel(%arg0: i32, %arg1: memref<1x2048xf32, #tpu.memory_space<vmem>>, %arg2: memref<1x2048xf32, #tpu.memory_space<vmem>>) attributes {dimension_semantics = [#tpu.dimension_semantics<parallel>], iteration_bounds = array<i64: 1>, scalar_prefetch = 0 : i64, scratch_operands = 0 : i64, tpu.core_type = #tpu.core_type<tc>, window_params = [{transform_indices = @transform_0, window_bounds = array<i64: 1, 2048>}, {transform_indices = @transform_1, window_bounds = array<i64: 1, 2048>}]} {
    %c0 = arith.constant 0 : index
    %c0_0 = arith.constant 0 : index
    %0 = vector.load %arg1[%c0, %c0_0] : memref<1x2048xf32, #tpu.memory_space<vmem>>, vector<1x2048xf32>
    %cst = arith.constant 3.000000e+00 : f32
    %1 = vector.broadcast %cst : f32 to vector<1x2048xf32>
    %2 = arith.addf %0, %1 : vector<1x2048xf32>
    %cst_1 = arith.constant 0.000000e+00 : f32
    %cst_2 = arith.constant 6.000000e+00 : f32
    %3 = vector.broadcast %cst_1 : f32 to vector<1x2048xf32>
    %4 = arith.maximumf %3, %2 : vector<1x2048xf32>
    %5 = vector.broadcast %cst_2 : f32 to vector<1x2048xf32>
    %6 = arith.minimumf %5, %4 : vector<1x2048xf32>
    %cst_3 = arith.constant 0.166666672 : f32
    %7 = vector.broadcast %cst_3 : f32 to vector<1x2048xf32>
    %8 = arith.mulf %6, %7 : vector<1x2048xf32>
    %9 = arith.mulf %0, %8 : vector<1x2048xf32>
    %c0_4 = arith.constant 0 : index
    %c0_5 = arith.constant 0 : index
    %10 = vector.load %arg2[%c0_4, %c0_5] : memref<1x2048xf32, #tpu.memory_space<vmem>>, vector<1x2048xf32>
    tpu.vector_store %arg2[%c0_4, %c0_5], %9 {strides = array<i32>} : memref<1x2048xf32, #tpu.memory_space<vmem>>, vector<1x2048xf32>,
    return
  }
  func.func @transform_0(%arg0: i32) -> (i32, i32) {
    %c0_i32 = arith.constant 0 : i32
    %c0_i32_0 = arith.constant 0 : i32
    return %arg0, %c0_i32 : i32, i32
  }
  func.func @transform_1(%arg0: i32) -> (i32, i32) {
    %c0_i32 = arith.constant 0 : i32
    %c0_i32_0 = arith.constant 0 : i32
    return %arg0, %c0_i32 : i32, i32
  }
}

</mosaic_0001>

<bundles_post_ra>
// kernel: tpu_custom_call.1
= control target key start
LH: loop header
LB: loop body
LE: loop exit
PB: predicated region body
PF: predicated region fallthrough
CT: control target
= control target key end

     0   :  { %6 = vsyncpa [#allocation3], 0  ;;  %s114_s0 = inlined_call_operand.hbm [shape: f32[1,2048], index: 0, kind: input, shape index: {}]   ;;  %s115_s1 = inlined_call_operand.hbm [shape: f32[1,2048], index: 1, kind: output, shape index: {}]  }
   0x1   :  { %7 = vsyncpa [#allocation4], 0  ;;  %s96_s6 = smov [#allocation2]  }
   0x2   :  { %s14_s7 = sshll.u32 %s96_s6, 4  ;;  %s15_s7 = int_to_ptr.vmem [resolvable:$true] %s14_s7 }
   0x3   :  { %s60_s8 = scalar_lea.vmem %s15_s7, 256  ;;  %p65_p1 = scmp.lt.s32.totalorder %s15_s7, %s15_s7 }
   0x4   :  { %p61_p0 = scmp.ne.s32.totalorder %s15_s7, %s60_s8  ;;  %p66_p2 = scmp.lt.s32.totalorder %s60_s8, %s60_s8 }
   0x6   :  { %p67_p3 = por %p66_p2, %p65_p1 }
   0x8   :  { %p68_p4 = pnand %p67_p3, %p61_p0 }
   0xa   :  { %71 = shalt.err (!%p68_p4)
}
   0xb   :  { %17 = dma.hbm_to_vmem [thread:$0]  %s114_s0, 256, %s15_s7, [#allocation3]  }
   0xc   :  { %92 = dma.done.wait [#allocation3], 256  }
   0xd   :  { %93 = vsyncadd [#allocation3], 4294967040  ;;  %v21_v0 = vld [vmem:[#allocation2] sm:$0xff]  ;;  %v22_v1 = vld [vmem:[#allocation2 + $0x8] sm:$0xff]  ;;  %s97_s11 = smov [#allocation5]  }
   0xe   :  { %v23_v2 = vadd.f32 3.0, %v21_v0  ;;  %v24_v3 = vadd.f32 3.0, %v22_v1  ;;  %s41_s12 = sshll.u32 %s97_s11, 4  ;;  %s42_s12 = int_to_ptr.vmem [resolvable:$true] %s41_s12 }
   0xf   :  { %s72_s0 = scalar_lea.vmem %s42_s12, 256  ;;  %p77_p6 = scmp.lt.s32.totalorder %s42_s12, %s42_s12 }
  0x10   :  { %v25_v4 = vmax.f32 %v23_v2, 0.0  ;;  %v26_v5 = vmax.f32 %v24_v3, 0.0  ;;  %p73_p5 = scmp.ne.s32.totalorder %s42_s12, %s72_s0  ;;  %p78_p7 = scmp.lt.s32.totalorder %s72_s0, %s72_s0 }
  0x12   :  { %v27_v6 = vmin.f32 %v25_v4, 6.0  ;;  %v28_v7 = vmin.f32 %v26_v5, 6.0  ;;  %p79_p8 = por %p78_p7, %p77_p6 }
  0x14   :  { %v29_v8 = vmul.f32 0.16666667, %v27_v6  ;;  %v30_v9 = vmul.f32 0.16666667, %v28_v7  ;;  %p80_p9 = pnand %p79_p8, %p73_p5 }
  0x16   :  { %v31_v10 = vmul.f32 %v29_v8, %v21_v0  ;;  %v32_v11 = vmul.f32 %v30_v9, %v22_v1 }
  0x18   :  { %33 = vst [vmem:[#allocation5] sm:$0xff] %v31_v10  ;;  %34 = vst [vmem:[#allocation5 + $0x8] sm:$0xff] %v32_v11 }
  0x19   :  { %83 = shalt.err (!%p80_p9)
}
  0x1a   :  { %44 = dma.vmem_to_hbm [thread:$0]  %s42_s12, 256, %s115_s1, [#allocation4]  }
  0x1b   :  { %94 = dma.done.wait [#allocation4], 256  }
  0x1c   :  { %95 = vsyncadd [#allocation4], 4294967040 }
  0x1d   :  { %48 = vsyncpa [#allocation3], 1 }
  0x1e   :  { %49 = vsyncpa [#allocation4], 1 }

</bundles_post_ra>
